<compile_context>
chip_gen: v5e
topology: v5e:2x2
jax: 0.10.0
libtpu: 0.0.40
codegen_flags: <defaults>
</compile_context>

<pallas_src>
import jax
import jax.numpy as jnp
from jax.experimental import pallas as pl
from jax.experimental.pallas import tpu as pltpu


def _lstm_seq_kernel(x_ref, h0_ref, c0_ref, wx_ref, wh_ref, b_ref, hout_ref,
                     h_sc, c_sc):
    # x_ref : (1, Bs, dim)     current time step's inputs for this batch shard
    # h0_ref: (Bs, hid)        initial hidden state (resident)
    # c0_ref: (Bs, hid)        initial cell state   (resident)
    # wx_ref: (dim, 4*hid)     input->gates weights, gate order (i, f, o, g), resident
    # wh_ref: (hid, 4*hid)     hidden->gates weights, resident
    # b_ref : (1, 4*hid)       fused bias, resident
    # hout  : (Bs, hid)        hidden state output (last write = final step)
    # h_sc/c_sc: (Bs, hid) f32 VMEM scratch carrying the recurrence across steps
    t = pl.program_id(1)
    hid = hout_ref.shape[-1]

    @pl.when(t == 0)
    def _():
        h_sc[...] = h0_ref[...].astype(jnp.float32)
        c_sc[...] = c0_ref[...].astype(jnp.float32)

    x = x_ref[0]          # (Bs, dim)
    h = h_sc[...]         # (Bs, hid)
    c = c_sc[...]         # (Bs, hid)

    # Two accumulating MXU matmuls -> lane-dense (Bs, 4*hid) gate block.
    gates = (jnp.dot(x, wx_ref[...], preferred_element_type=jnp.float32)
             + jnp.dot(h, wh_ref[...], preferred_element_type=jnp.float32)
             + b_ref[...])

    # One sigmoid pass over the whole block (covers i, f, o), one tanh on g.
    sig = jax.nn.sigmoid(gates)
    i_g = sig[:, 0 * hid:1 * hid]
    f_g = sig[:, 1 * hid:2 * hid]
    o_g = sig[:, 2 * hid:3 * hid]
    g_g = jnp.tanh(gates[:, 3 * hid:4 * hid])

    c_new = f_g * c + i_g * g_g
    h_new = o_g * jnp.tanh(c_new)

    h_sc[...] = h_new
    c_sc[...] = c_new
    # Cheap unconditional store; the last time step's write is the final value.
    hout_ref[...] = h_new.astype(hout_ref.dtype)


def prepare_lstm_cell_params(weight_ih, weight_hh, bias_ih, bias_hh):
    """One-time repack of PyTorch-layout LSTMCell params into the kernel layout.

    weight_ih: (4*hid, dim), weight_hh: (4*hid, hid), biases: (4*hid,).
    PyTorch gate order along 4*hid is (i, f, g, o); reorder to (i, f, o, g) so the
    sigmoid gates form one contiguous 3*hid slab.

    Returns:
      wx: (dim, 4*hid), wh: (hid, 4*hid), b: (1, 4*hid), all f32.
    """
    hid = weight_hh.shape[1]
    dim = weight_ih.shape[1]
    perm = jnp.array([0, 1, 3, 2])  # (i, f, g, o) -> (i, f, o, g)

    w_ih = weight_ih.reshape(4, hid, dim)[perm]    # (4, hid, dim)
    w_hh = weight_hh.reshape(4, hid, hid)[perm]    # (4, hid, hid)
    b = (bias_ih + bias_hh).reshape(4, hid)[perm]  # (4, hid)

    wx = w_ih.reshape(4 * hid, dim).T              # (dim, 4*hid)
    wh = w_hh.reshape(4 * hid, hid).T              # (hid, 4*hid)
    b_fused = b.reshape(1, 4 * hid)
    return (wx.astype(jnp.float32), wh.astype(jnp.float32),
            b_fused.astype(jnp.float32))


def lstm_sequence(x_seq, h0, c0, wx, wh, b, *, num_batch_shards=1):
    """Run an LSTM over a sequence entirely inside one pallas_call.

    x_seq: (T, B, dim), h0/c0: (B, hid).  Returns final hidden state (B, hid).
    num_batch_shards adds a leading "parallel" grid axis (v7x: one shard per TC).
    """
    T, B, dim = x_seq.shape
    hid = h0.shape[-1]
    four_h = 4 * hid
    S = num_batch_shards
    assert B % S == 0, "batch must divide evenly across shards"
    Bs = B // S

    return pl.pallas_call(
        _lstm_seq_kernel,
        out_shape=jax.ShapeDtypeStruct((B, hid), jnp.float32),
        grid_spec=pltpu.PrefetchScalarGridSpec(
            num_scalar_prefetch=0,
            grid=(S, T),
            in_specs=[
                pl.BlockSpec((1, Bs, dim), lambda s, t: (t, s, 0)),   # x step
                pl.BlockSpec((Bs, hid), lambda s, t: (s, 0)),         # h0 (resident per shard)
                pl.BlockSpec((Bs, hid), lambda s, t: (s, 0)),         # c0 (resident per shard)
                pl.BlockSpec((dim, four_h), lambda s, t: (0, 0)),     # wx (VMEM-resident)
                pl.BlockSpec((hid, four_h), lambda s, t: (0, 0)),     # wh (VMEM-resident)
                pl.BlockSpec((1, four_h), lambda s, t: (0, 0)),       # bias (VMEM-resident)
            ],
            out_specs=pl.BlockSpec((Bs, hid), lambda s, t: (s, 0)),
            scratch_shapes=[
                pltpu.VMEM((Bs, hid), jnp.float32),  # h carry
                pltpu.VMEM((Bs, hid), jnp.float32),  # c carry
            ],
        ),
        compiler_params=pltpu.CompilerParams(
            dimension_semantics=("parallel", "arbitrary")),
    )(x_seq, h0, c0, wx, wh, b)


def lstm_cell_forward(x, h, wx, wh, b):
    """Mirrors the PyTorch module's forward: x:(dim,), h:(hid,) -> hx:(1, hid).

    The module calls lstmcell(x, (h, h)), so the initial cell state is h.
    """
    dim = x.shape[0]
    hid = h.shape[0]
    x_seq = x.reshape(1, 1, dim).astype(jnp.float32)   # (T=1, B=1, dim)
    h0 = h.reshape(1, hid).astype(jnp.float32)
    c0 = h0                                            # module passes (h, h)
    return lstm_sequence(x_seq, h0, c0, wx, wh, b, num_batch_shards=1)


def _reference_step(x, h, c, weight_ih, weight_hh, bias_ih, bias_hh):
    """Pure-JAX single-step torch.nn.LSTMCell reference (PyTorch gate order i,f,g,o)."""
    hid = h.shape[-1]
    gates = x @ weight_ih.T + bias_ih + h @ weight_hh.T + bias_hh  # (B, 4*hid)
    i = jax.nn.sigmoid(gates[:, 0 * hid:1 * hid])
    f = jax.nn.sigmoid(gates[:, 1 * hid:2 * hid])
    g = jnp.tanh(gates[:, 2 * hid:3 * hid])
    o = jax.nn.sigmoid(gates[:, 3 * hid:4 * hid])
    c_new = f * c + i * g
    h_new = o * jnp.tanh(c_new)
    return h_new, c_new


if __name__ == "__main__":
    dim, hid = 16, 32

    key = jax.random.PRNGKey(0)
    keys = jax.random.split(key, 8)

    # Deterministic params mimicking PyTorch's U(-1/sqrt(hid), 1/sqrt(hid)) init.
    bound = 1.0 / jnp.sqrt(jnp.float32(hid))
    weight_ih = jax.random.uniform(keys[0], (4 * hid, dim), jnp.float32, -bound, bound)
    weight_hh = jax.random.uniform(keys[1], (4 * hid, hid), jnp.float32, -bound, bound)
    bias_ih = jax.random.uniform(keys[2], (4 * hid,), jnp.float32, -bound, bound)
    bias_hh = jax.random.uniform(keys[3], (4 * hid,), jnp.float32, -bound, bound)

    # One-time parameter repacking (hoisted out of the per-call path).
    wx, wh, b = prepare_lstm_cell_params(weight_ih, weight_hh, bias_ih, bias_hh)
    wx, wh, b = jax.block_until_ready((wx, wh, b))

    # --- 1) Module-equivalent forward: 1-D x and h, state (h, h), T=1, B=1. ---
    x = jax.random.normal(keys[4], (dim,), jnp.float32)
    h = jax.random.normal(keys[5], (hid,), jnp.float32)

    hx = jax.block_until_ready(lstm_cell_forward(x, h, wx, wh, b))
    ref_h, _ = _reference_step(x.reshape(1, -1), h.reshape(1, -1), h.reshape(1, -1),
                               weight_ih, weight_hh, bias_ih, bias_hh)
    assert hx.shape == (1, hid), hx.shape
    assert jnp.allclose(hx, ref_h, atol=1e-4, rtol=1e-4), "single-step mismatch"

    # --- 2) Batched, time-looped path (perf-review structure): T=8, B=16, 2 shards. ---
    T, B, S = 8, 16, 2
    xs = jax.random.normal(keys[6], (T, B, dim), jnp.float32)
    h0 = jax.random.normal(keys[7], (B, hid), jnp.float32)
    c0 = h0

    h_last = jax.block_until_ready(
        lstm_sequence(xs, h0, c0, wx, wh, b, num_batch_shards=S))

    def scan_step(carry, x_t):
        h_c, c_c = carry
        h_n, c_n = _reference_step(x_t, h_c, c_c, weight_ih, weight_hh,
                                   bias_ih, bias_hh)
        return (h_n, c_n), None

    (h_ref, _), _ = jax.lax.scan(scan_step, (h0, c0), xs)
    assert h_last.shape == (B, hid), h_last.shape
    assert jnp.allclose(h_last, h_ref, atol=1e-4, rtol=1e-4), "sequence mismatch"

    print("KERNEL_OK")
</pallas_src>

<mosaic_0001>
module attributes {stable_mosaic.version = 11 : i64} {
  func.func @_lstm_seq_kernel(%arg0: i32, %arg1: i32, %arg2: memref<1x1x16xf32, #tpu.memory_space<vmem>>, %arg3: memref<1x32xf32, #tpu.memory_space<vmem>>, %arg4: memref<1x32xf32, #tpu.memory_space<vmem>>, %arg5: memref<16x128xf32, #tpu.memory_space<vmem>>, %arg6: memref<32x128xf32, #tpu.memory_space<vmem>>, %arg7: memref<1x128xf32, #tpu.memory_space<vmem>>, %arg8: memref<1x32xf32, #tpu.memory_space<vmem>>, %arg9: memref<1x32xf32, #tpu.memory_space<vmem>>, %arg10: memref<1x32xf32, #tpu.memory_space<vmem>>) attributes {dimension_semantics = [#tpu.dimension_semantics<parallel>, #tpu.dimension_semantics<arbitrary>], iteration_bounds = array<i64: 1, 1>, scalar_prefetch = 0 : i64, scratch_operands = 2 : i64, tpu.core_type = #tpu.core_type<tc>, window_params = [{transform_indices = @transform_0, window_bounds = array<i64: 1, 1, 16>}, {transform_indices = @transform_1, window_bounds = array<i64: 1, 32>}, {transform_indices = @transform_2, window_bounds = array<i64: 1, 32>}, {pipeline_mode = #tpu.pipeline_mode<synchronous>, transform_indices = @transform_3, window_bounds = array<i64: 16, 128>}, {pipeline_mode = #tpu.pipeline_mode<synchronous>, transform_indices = @transform_4, window_bounds = array<i64: 32, 128>}, {pipeline_mode = #tpu.pipeline_mode<synchronous>, transform_indices = @transform_5, window_bounds = array<i64: 1, 128>}, {transform_indices = @transform_6, window_bounds = array<i64: 1, 32>}]} {
    %c0_i32 = arith.constant 0 : i32
    %0 = arith.cmpi eq, %arg1, %c0_i32 : i32
    %1 = arith.extui %0 : i1 to i32
    %c0_i32_0 = arith.constant 0 : i32
    %2 = arith.cmpi ne, %1, %c0_i32_0 : i32
    scf.if %2 {
      %c0_21 = arith.constant 0 : index
      %c0_22 = arith.constant 0 : index
      %32 = vector.load %arg3[%c0_21, %c0_22] : memref<1x32xf32, #tpu.memory_space<vmem>>, vector<1x32xf32>
      %c0_23 = arith.constant 0 : index
      %c0_24 = arith.constant 0 : index
      %33 = vector.load %arg9[%c0_23, %c0_24] : memref<1x32xf32, #tpu.memory_space<vmem>>, vector<1x32xf32>
      tpu.vector_store %arg9[%c0_23, %c0_24], %32 {strides = array<i32>} : memref<1x32xf32, #tpu.memory_space<vmem>>, vector<1x32xf32>,
      %c0_25 = arith.constant 0 : index
      %c0_26 = arith.constant 0 : index
      %34 = vector.load %arg4[%c0_25, %c0_26] : memref<1x32xf32, #tpu.memory_space<vmem>>, vector<1x32xf32>
      %c0_27 = arith.constant 0 : index
      %c0_28 = arith.constant 0 : index
      %35 = vector.load %arg10[%c0_27, %c0_28] : memref<1x32xf32, #tpu.memory_space<vmem>>, vector<1x32xf32>
      tpu.vector_store %arg10[%c0_27, %c0_28], %34 {strides = array<i32>} : memref<1x32xf32, #tpu.memory_space<vmem>>, vector<1x32xf32>,
    } else {
    }
    %c0 = arith.constant 0 : index
    %c0_1 = arith.constant 0 : index
    %c0_2 = arith.constant 0 : index
    %3 = vector.load %arg2[%c0, %c0_1, %c0_2] : memref<1x1x16xf32, #tpu.memory_space<vmem>>, vector<1x1x16xf32>
    %4 = vector.shape_cast %3 : vector<1x1x16xf32> to vector<1x16xf32>
    %c0_3 = arith.constant 0 : index
    %c0_4 = arith.constant 0 : index
    %5 = vector.load %arg9[%c0_3, %c0_4] : memref<1x32xf32, #tpu.memory_space<vmem>>, vector<1x32xf32>
    %c0_5 = arith.constant 0 : index
    %c0_6 = arith.constant 0 : index
    %6 = vector.load %arg10[%c0_5, %c0_6] : memref<1x32xf32, #tpu.memory_space<vmem>>, vector<1x32xf32>
    %c0_7 = arith.constant 0 : index
    %c0_8 = arith.constant 0 : index
    %7 = vector.load %arg5[%c0_7, %c0_8] : memref<16x128xf32, #tpu.memory_space<vmem>>, vector<16x128xf32>
    %cst = arith.constant dense<0.000000e+00> : vector<1x128xf32>
    %8 = tpu.matmul %4, %7, %cst {dimension_numbers = #tpu.dot_dimension_numbers<[1], [0], [0], [1], [0, 0, 1, 1], [], []>} : vector<1x16xf32>, vector<16x128xf32>, vector<1x128xf32> -> vector<1x128xf32>
    %c0_9 = arith.constant 0 : index
    %c0_10 = arith.constant 0 : index
    %9 = vector.load %arg6[%c0_9, %c0_10] : memref<32x128xf32, #tpu.memory_space<vmem>>, vector<32x128xf32>
    %cst_11 = arith.constant dense<0.000000e+00> : vector<1x128xf32>
    %10 = tpu.matmul %5, %9, %cst_11 {dimension_numbers = #tpu.dot_dimension_numbers<[1], [0], [0], [1], [0, 0, 1, 1], [], []>} : vector<1x32xf32>, vector<32x128xf32>, vector<1x128xf32> -> vector<1x128xf32>
    %11 = arith.addf %8, %10 : vector<1x128xf32>
    %c0_12 = arith.constant 0 : index
    %c0_13 = arith.constant 0 : index
    %12 = vector.load %arg7[%c0_12, %c0_13] : memref<1x128xf32, #tpu.memory_space<vmem>>, vector<1x128xf32>
    %13 = arith.addf %11, %12 : vector<1x128xf32>
    %14 = arith.negf %13 : vector<1x128xf32>
    %15 = math.exp %14 : vector<1x128xf32>
    %cst_14 = arith.constant 1.000000e+00 : f32
    %16 = vector.broadcast %cst_14 : f32 to vector<1x128xf32>
    %17 = arith.addf %16, %15 : vector<1x128xf32>
    %18 = arith.divf %16, %17 : vector<1x128xf32>
    %19 = vector.extract_strided_slice %18 {offsets = [0, 0], sizes = [1, 32], strides = [1, 1]} : vector<1x128xf32> to vector<1x32xf32>
    %20 = vector.extract_strided_slice %18 {offsets = [0, 32], sizes = [1, 32], strides = [1, 1]} : vector<1x128xf32> to vector<1x32xf32>
    %21 = vector.extract_strided_slice %18 {offsets = [0, 64], sizes = [1, 32], strides = [1, 1]} : vector<1x128xf32> to vector<1x32xf32>
    %22 = vector.extract_strided_slice %13 {offsets = [0, 96], sizes = [1, 32], strides = [1, 1]} : vector<1x128xf32> to vector<1x32xf32>
    %23 = math.tanh %22 : vector<1x32xf32>
    %24 = arith.mulf %20, %6 : vector<1x32xf32>
    %25 = arith.mulf %19, %23 : vector<1x32xf32>
    %26 = arith.addf %24, %25 : vector<1x32xf32>
    %27 = math.tanh %26 : vector<1x32xf32>
    %28 = arith.mulf %21, %27 : vector<1x32xf32>
    %c0_15 = arith.constant 0 : index
    %c0_16 = arith.constant 0 : index
    %29 = vector.load %arg9[%c0_15, %c0_16] : memref<1x32xf32, #tpu.memory_space<vmem>>, vector<1x32xf32>
    tpu.vector_store %arg9[%c0_15, %c0_16], %28 {strides = array<i32>} : memref<1x32xf32, #tpu.memory_space<vmem>>, vector<1x32xf32>,
    %c0_17 = arith.constant 0 : index
    %c0_18 = arith.constant 0 : index
    %30 = vector.load %arg10[%c0_17, %c0_18] : memref<1x32xf32, #tpu.memory_space<vmem>>, vector<1x32xf32>
    tpu.vector_store %arg10[%c0_17, %c0_18], %26 {strides = array<i32>} : memref<1x32xf32, #tpu.memory_space<vmem>>, vector<1x32xf32>,
    %c0_19 = arith.constant 0 : index
    %c0_20 = arith.constant 0 : index
    %31 = vector.load %arg8[%c0_19, %c0_20] : memref<1x32xf32, #tpu.memory_space<vmem>>, vector<1x32xf32>
    tpu.vector_store %arg8[%c0_19, %c0_20], %28 {strides = array<i32>} : memref<1x32xf32, #tpu.memory_space<vmem>>, vector<1x32xf32>,
    return
  }
  func.func @transform_0(%arg0: i32, %arg1: i32) -> (i32, i32, i32) {
    %c0_i32 = arith.constant 0 : i32
    %c0_i32_0 = arith.constant 0 : i32
    return %arg1, %arg0, %c0_i32 : i32, i32, i32
  }
  func.func @transform_1(%arg0: i32, %arg1: i32) -> (i32, i32) {
    %c0_i32 = arith.constant 0 : i32
    %c0_i32_0 = arith.constant 0 : i32
    return %arg0, %c0_i32 : i32, i32
  }
  func.func @transform_2(%arg0: i32, %arg1: i32) -> (i32, i32) {
    %c0_i32 = arith.constant 0 : i32
    %c0_i32_0 = arith.constant 0 : i32
    return %arg0, %c0_i32 : i32, i32
  }
  func.func @transform_3(%arg0: i32, %arg1: i32) -> (i32, i32) {
    %c0_i32 = arith.constant 0 : i32
    %c0_i32_0 = arith.constant 0 : i32
    %c0_i32_1 = arith.constant 0 : i32
    return %c0_i32, %c0_i32_0 : i32, i32
  }
  func.func @transform_4(%arg0: i32, %arg1: i32) -> (i32, i32) {
    %c0_i32 = arith.constant 0 : i32
    %c0_i32_0 = arith.constant 0 : i32
    %c0_i32_1 = arith.constant 0 : i32
    return %c0_i32, %c0_i32_0 : i32, i32
  }
  func.func @transform_5(%arg0: i32, %arg1: i32) -> (i32, i32) {
    %c0_i32 = arith.constant 0 : i32
    %c0_i32_0 = arith.constant 0 : i32
    %c0_i32_1 = arith.constant 0 : i32
    return %c0_i32, %c0_i32_0 : i32, i32
  }
  func.func @transform_6(%arg0: i32, %arg1: i32) -> (i32, i32) {
    %c0_i32 = arith.constant 0 : i32
    %c0_i32_0 = arith.constant 0 : i32
    return %arg0, %c0_i32 : i32, i32
  }
}

</mosaic_0001>

<bundles_post_ra>
// kernel: tpu_custom_call.1
= control target key start
LH: loop header
LB: loop body
LE: loop exit
PB: predicated region body
PF: predicated region fallthrough
CT: control target
= control target key end

     0   :  { %11 = vsyncpa [#allocation5], 0  ;;  %s449_s0 = inlined_call_operand.hbm [shape: f32[1,1,16], index: 0, kind: input, shape index: {}]   ;;  %s450_s1 = inlined_call_operand.hbm [shape: f32[1,32], index: 1, kind: input, shape index: {}]   ;;  %s451_s2 = inlined_call_operand.vmem [shape: f32[1,32], index: 2, kind: input, shape index: {}]   ;;  %s452_s3 = inlined_call_operand.hbm [shape: f32[16,128], index: 3, kind: input, shape index: {}]   ;;  %s453_s4 = inlined_call_operand.hbm [shape: f32[32,128], index: 4, kind: input, shape index: {}]   ;;  %s454_s5 = inlined_call_operand.vmem [shape: f32[1,128], index: 5, kind: input, shape index: {}]   ;;  %s455_s6 = inlined_call_operand.hbm [shape: f32[1,32], index: 6, kind: output, shape index: {}]  }
   0x1   :  { %12 = vsyncpa [#allocation8], 0 }
   0x2   :  { %13 = vsyncpa [#allocation11], 0  ;;  %s31_s23 = sshll.u32 %s450_s1, 4  ;;  %s32_s23 = int_to_ptr.hbm [resolvable:$true] %s31_s23 }
   0x3   :  { %14 = vsyncpa [#allocation6], 0  ;;  %s374_s24 = smov [#allocation7]   ;;  %s20_s28 = sshll.u32 %s449_s0, 4  ;;  %s21_s28 = int_to_ptr.hbm [resolvable:$true] %s20_s28 }
   0x4   :  { %s33_s25 = sshll.u32 %s374_s24, 4  ;;  %s375_s29 = smov [#allocation4]   ;;  %s34_s25 = int_to_ptr.vmem [resolvable:$true] %s33_s25 }
   0x5   :  { %36 = dma.hbm_to_vmem [thread:$0]  %s32_s23, 16, %s34_s25, [#allocation8]  }
   0x6   :  { %s22_s30 = sshll.u32 %s375_s29, 4  ;;  %s43_s9 = sshll.u32 %s452_s3, 4  ;;  %s23_s30 = int_to_ptr.vmem [resolvable:$true] %s22_s30  ;;  %s44_s9 = int_to_ptr.hbm [resolvable:$true] %s43_s9 }
   0x7   :  { %25 = dma.hbm_to_vmem [thread:$0]  %s21_s28, 16, %s23_s30, [#allocation5]  }
   0x8   :  { %s376_s1 = smov [#allocation9]   ;;  %s56_s13 = sshll.u32 %s453_s4, 4  ;;  %s57_s13 = int_to_ptr.hbm [resolvable:$true] %s56_s13 }
   0x9   :  { %s45_s10 = sshll.u32 %s376_s1, 4  ;;  %s377_s14 = smov 128   ;;  %s46_s10 = int_to_ptr.vmem [resolvable:$true] %s45_s10 }
   0xa   :  { %s378_s0 = smov 8   ;;  %s379_s15 = smov [#allocation10]  }
   0xb   :  { %51 = dma.hbm_to_vmem [thread:$0]  %s44_s9, 256, %s46_s10, [#allocation8], %s377_s14, %s377_s14, %s378_s0  }
   0xc   :  { %s58_s16 = sshll.u32 %s379_s15, 4  ;;  %s59_s16 = int_to_ptr.vmem [resolvable:$true] %s58_s16 }
   0xd   :  { %64 = dma.hbm_to_vmem [thread:$0]  %s57_s13, 512, %s59_s16, [#allocation11], %s377_s14, %s377_s14, %s378_s0  }
   0xe   :  { %366 = dma.done.wait [#allocation5], 16  }
   0xf   :  { %367 = vsyncadd [#allocation5], 4294967280 }
  0x10   :  { %368 = dma.done.wait [#allocation8], 272  }
  0x11   :  { %369 = vsyncadd [#allocation8], 4294967024 }
  0x12   :  { %370 = dma.done.wait [#allocation11], 512  }
  0x13   :  { %371 = vsyncadd [#allocation11], 4294966784  ;;  %v100_v0 = vld [vmem:[#allocation10 + $0x18] sm:$0xff]  ;;  %v99_v1 = vld [vmem:[#allocation10 + $0x10] sm:$0xff]  ;;  %vm88_vm0 = vcmask 253952   ;;  %vm125_vm1 = vcmask 130048  }
  0x14   :  { %117 = vmatpush.msra.mxu0 %v100_v0  ;;  %v96_v2 = vld [vmem:[#allocation9 + $0x8] sm:$0xff]  ;;  %v95_v3 = vld [vmem:[#allocation9] sm:$0xff]  ;;  %v98_v4 = vld [vmem:[#allocation10 + $0x8] sm:$0xff]  ;;  %vm101_vm2 = vcmask 261120   ;;  %s380_s19 = smov 32   ;;  %s383_s20 = smov [#allocation12]  }
  0x15   :  { %143 = vmatpush.msra.mxu1 %v96_v2  ;;  %v87_v5 = vld [vmem:[#allocation7] sm:$0x1]  ;;  %v92_v6 = vld [vmem:[#allocation4] sm:$0x1]  ;;  %v97_v7 = vld [vmem:[#allocation10] sm:$0xff]  ;;  %s210_s21 = sshll.u32 %s383_s20, 4  ;;  %s211_s21 = int_to_ptr.vmem [resolvable:$true] %s210_s21 }
  0x16   :  { %118 = vmatpush.msra.mxu0 %v99_v1  ;;  %89 = vst.msk [vmem:[#allocation2] sm:$0x1] %vm88_vm0, %v87_v5  ;;  %v90_v9 = vld [vmem:[%s451_s2] sm:$0x1]  ;;  %s381_s2 = smov 64   ;;  %s212_s24 = sshll.u32 %s455_s6, 4  ;;  %s213_s24 = int_to_ptr.hbm [resolvable:$true] %s212_s24 }
  0x17   :  { %144 = vmatpush.msra.mxu1 %v95_v3  ;;  %91 = vst.msk [vmem:[#allocation3] sm:$0x1] %vm88_vm0, %v90_v9  ;;  %v149_v12 = vld [vmem:[%s454_s5] sm:$0x1]  ;;  %s382_s5 = smov 96  }
  0x18   :  { %119 = vmatpush.msra.mxu0 %v98_v4  ;;  %225 = vmatmul.msk.f32.vlgmr.msra.gmra.mxu1 %vm125_vm1, %v92_v6 }
  0x1a   :  { %120 = vmatpush.msra.mxu0 %v97_v7 }
  0x1d   :  { %v93_v8 = vld [vmem:[#allocation2] sm:$0x1] }
  0x1e   :  { %224 = vmatmul.msk.f32.vlgmr.msra.gmra.mxu0 %vm101_vm2, %v93_v8  ;;  %v237_v16 = vld [vmem:[#allocation3] ss:$0 sm:$0xff] }
  0x95   :  { %v146_v10 = vpop.f32.mrf.mxu1 }
  0x9b   :  { %v122_v11 = vpop.f32.mrf.mxu0 }
  0x9c   :  { %v147_v13 = vadd.f32 %v146_v10, %v122_v11 }
  0x9e   :  { %v150_v14 = vadd.f32 %v149_v12, %v147_v13 }
  0xa0   :  { %238 = vtanh.f32 %v150_v14  ;;  %v226_v17 = vmul.f32 -1.442695, %v150_v14 }
  0xa2   :  { %240 = vpow2.f32 %v226_v17 }
  0xa6   :  { %v239_v15 = vpop.eup %238 }
  0xa7   :  { %178 = vrot.lane.b32.xlu0 %v239_v15, %s380_s19 }
  0xa8   :  { %v241_v18 = vpop.eup %240 }
  0xa9   :  { %v154_v19 = vadd.f32 1.0, %v241_v18 }
  0xab   :  { %242 = vrcp.f32 %v154_v19  ;;  %v166_v25 = vand.u32 2147483648, %v154_v19  ;;  %vm160_vm4 = vweird.f32 %v154_v19  ;;  %v164_v26 = vand.u32 2147483647, %v154_v19 }
  0xad   :  { %v167_v28 = vor.u32 1.1754944e-38, %v166_v25  ;;  %vm165_vm6 = vcmp.eq.f32.partialorder %v164_v26, 8.507059e+37 }
  0xaf   :  { %173 = vrot.lane.b32.xlu0 %v237_v16, %s380_s19 }
  0xb1   :  { %v243_v20 = vpop.eup %242 }
  0xb2   :  { %v156_v21 = vmul.f32 %v243_v20, %v154_v19  ;;  %vm161_vm3 = vweird.f32 %v243_v20 }
  0xb3   :  { %vm162_vm5 = vmor %vm160_vm4, %vm161_vm3 }
  0xb4   :  { %v157_v22 = vsub.f32 1.0, %v156_v21 }
  0xb6   :  { %v158_v23 = vmul.f32 %v243_v20, %v157_v22 }
  0xb8   :  { %v159_v24 = vadd.f32 %v243_v20, %v158_v23 }
  0xba   :  { %v163_v27 = vsel %vm162_vm5, %v243_v20, %v159_v24 }
  0xbb   :  { %v168_v30 = vsel %vm165_vm6, %v167_v28, %v163_v27 }
 0x119   :  { %v179_v29 = vpop.permute.xlu0 %178 }
 0x11a   :  { %v181_v31 = vmul.f32 %v179_v29, %v168_v30 }
 0x11c   :  { %183 = vrot.lane.b32.xlu1 %v181_v31, %s380_s19 }
 0x121   :  { %v174_v32 = vpop.permute.xlu0 %173 }
 0x122   :  { %v176_v33 = vmul.f32 %v174_v32, %v168_v30 }
 0x18e   :  { %v184_v34 = vpop.permute.xlu1 %183 }
 0x18f   :  { %v186_v35 = vadd.f32 %v184_v34, %v176_v33 }
 0x191   :  { %244 = vtanh.f32 %v186_v35 }
 0x197   :  { %v245_v36 = vpop.eup %244 }
 0x198   :  { %189 = vrot.lane.b32.xlu1 %v245_v36, %s380_s19 }
 0x20a   :  { %v190_v37 = vpop.permute.xlu1 %189 }
 0x20b   :  { %v192_v38 = vmul.f32 %v190_v37, %v168_v30 }
 0x20d   :  { %194 = vrot.lane.b32.xlu2 %v192_v38, %s381_s2 }
 0x215   :  { %200 = vrot.lane.b32.xlu2 %v186_v35, %s382_s5 }
 0x267   :  { %v195_v39 = vpop.permute.xlu2 %194 }
 0x268   :  { %198 = vst.msk [vmem:[#allocation2] sm:$0x1] %vm88_vm0, %v195_v39 }
 0x269   :  { %204 = vst.msk [vmem:[#allocation12] sm:$0x1] %vm88_vm0, %v195_v39 }
 0x26a   :  { %215 = dma.vmem_to_hbm [thread:$0]  %s211_s21, 16, %s213_s24, [#allocation6]  }
 0x26f   :  { %v201_v40 = vpop.permute.xlu2 %200 }
 0x270   :  { %203 = vst.msk [vmem:[#allocation3] sm:$0x1] %vm88_vm0, %v201_v40 }
 0x271   :  { %372 = dma.done.wait [#allocation6], 16  }
 0x272   :  { %373 = vsyncadd [#allocation6], 4294967280 }
 0x273   :  { %220 = vsyncpa [#allocation5], 1 }
 0x274   :  { %221 = vsyncpa [#allocation8], 1 }
 0x275   :  { %222 = vsyncpa [#allocation11], 1 }
 0x276   :  { %223 = vsyncpa [#allocation6], 1 }

</bundles_post_ra>
